<compile_context>
chip_gen: v7x
topology: tpu7x:2x2x1
jax: 0.10.0
libtpu: 0.0.40
codegen_flags: <defaults>
</compile_context>

<pallas_src>
import functools
import numpy as np

import jax
import jax.numpy as jnp
from jax import lax
from jax.experimental import pallas as pl
from jax.experimental.pallas import tpu as pltpu


# ----------------------------- small int helpers ----------------------------

def _i32(x):
    """uint32 literal -> int32 constant with the identical bit pattern."""
    x &= 0xFFFFFFFF
    if x >= 0x80000000:
        x -= 0x100000000
    return jnp.int32(x)


_MIX_C1 = 0x7FEB352D
_MIX_C2 = 0x846CA68B
_GOLD = 0x9E3779B9


def _lsr(x, k):
    """Logical right shift on int32 (arithmetic shift + mask; portable)."""
    return (x >> k) & jnp.int32((1 << (32 - k)) - 1)


def _mix32(x):
    """splitmix32-style finalizer on int32 bit patterns (wrapping mul is fine)."""
    x = x ^ _lsr(x, 16)
    x = x * _i32(_MIX_C1)
    x = x ^ _lsr(x, 15)
    x = x * _i32(_MIX_C2)
    x = x ^ _lsr(x, 16)
    return x


def _bits_to_unit(bits):
    """int32 random bits -> float32 uniform in [1, 2) via exponent trick."""
    word = _lsr(bits, 9) | jnp.int32(0x3F800000)
    return lax.bitcast_convert_type(word, jnp.float32)


def _std_normal(shape, salt):
    """Counter-based approx N(0,1) noise of `shape` = (C, L); pure jnp ops."""
    c, l = shape
    if l % 2 == 0:
        # Use BOTH Box-Muller outputs: half the PRNG / log / sqrt / trig work.
        half = l // 2
        lin = (lax.broadcasted_iota(jnp.int32, (c, half), 0) * jnp.int32(half)
               + lax.broadcasted_iota(jnp.int32, (c, half), 1))
        k1 = _mix32(lin ^ salt)
        k2 = _mix32(k1 ^ _i32(_GOLD))
        u1 = 2.0 - _bits_to_unit(k1)                      # (0, 1]  (log-safe)
        u2 = _bits_to_unit(k2) - 1.0                      # [0, 1)
        r = jnp.sqrt(-2.0 * jnp.log(u1))
        theta = (2.0 * np.pi) * u2
        return jnp.concatenate([r * jnp.cos(theta), r * jnp.sin(theta)], axis=1)
    # Fallback for odd lane extents: cos branch only.
    lin = (lax.broadcasted_iota(jnp.int32, (c, l), 0) * jnp.int32(l)
           + lax.broadcasted_iota(jnp.int32, (c, l), 1))
    k1 = _mix32(lin ^ salt)
    k2 = _mix32(k1 ^ _i32(_GOLD))
    u1 = 2.0 - _bits_to_unit(k1)
    u2 = _bits_to_unit(k2) - 1.0
    r = jnp.sqrt(-2.0 * jnp.log(u1))
    return r * jnp.cos((2.0 * np.pi) * u2)


# --------------------------------- kernel -----------------------------------

def _sampler_kernel(coef_ref, seed_ref, bias_ref, w_ref, x_ref, out_ref):
    # coef_ref : SMEM f32[3, T]     rows [mean_c, eps_c, sigma] in grid (= reversed
    #                               time) order; long axis last (SMEM-friendly).
    # seed_ref : SMEM i32[1]        base PRNG seed.
    # bias_ref : VMEM f32[T, C, 1]  synthetic eps-model time bias, grid order.
    # w_ref    : VMEM f32[C, C, 1]  1x1 conv weight; w_ref[ci, co, 0].
    # x_ref    : VMEM f32[1, C, THW]  x_T tile (read once).
    # out_ref  : VMEM f32[1, C, THW]  x_0 tile (written once, lane-dense).
    _, C, THW = out_ref.shape
    T = coef_ref.shape[1]

    b = pl.program_id(0)
    s = pl.program_id(1)
    n_s = pl.num_programs(1)

    # Loop-invariant hoists: weight columns and per-(b, s) PRNG salt.
    w_cols = [w_ref[ci] for ci in range(C)]                 # each (C, 1)
    block_salt = _mix32(_mix32(seed_ref[0]) ^ ((b * n_s + s + 1) * _i32(_GOLD)))

    def eps_model(x, t):
        # 1x1 channel-mixing conv + time bias + tanh, vectorized over the full
        # (C, THW) slab: (C,1) x (1,THW) broadcast FMAs on the VPU (no MXU).
        acc = w_cols[0] * x[0:1, :]
        for ci in range(1, C):
            acc = acc + w_cols[ci] * x[ci:ci + 1, :]
        return jnp.tanh(acc + bias_ref[t])                  # bias_ref[t]: (C, 1)

    def posterior_mean(x, t):
        return coef_ref[0, t] * (x - coef_ref[1, t] * eps_model(x, t))

    def body(t, x):
        sigma = coef_ref[2, t]
        salt = _mix32(block_salt ^ ((t + 1) * _i32(_MIX_C2)))
        noise = _std_normal((C, THW), salt)
        return posterior_mean(x, t) + sigma * noise

    x = x_ref[0]                                            # (C, THW), f32
    # Reverse diffusion: loop index t = 0 .. T-1 maps to time_step = T-1 .. 0.
    # Steps with noise (time_step > 0):
    x = lax.fori_loop(0, T - 1, body, x)
    # Last step (time_step == 0): Algorithm 2 uses noise = 0 -> no PRNG work.
    x = posterior_mean(x, T - 1)
    out_ref[0] = jnp.clip(x, -1.0, 1.0)                     # single dense store


# ------------------------------- host wrapper -------------------------------

def _pick_tile_hw(hw, batch, channels, block_budget_bytes=4 << 20):
    """Largest lane-dense H*W tile within a per-block VMEM budget; when
    batch == 1, split into >= 2 blocks so both v7x TensorCores get work."""
    if hw % 128 != 0:
        return hw                                # small / odd extents: full axis
    budget_elems = max(128, block_budget_bytes // (4 * channels))

    def ok(t):
        return t <= budget_elems and (batch >= 2 or hw // t >= 2 or t == 128)

    tile = hw
    while tile > 128 and not ok(tile):
        nt = tile // 2
        if nt % 128 != 0 or hw % nt != 0:
            break
        tile = nt
    return tile


@functools.partial(jax.jit, static_argnames=("tile_hw",))
def _run_sampler(coef, seed, bias, w_cols, x, *, tile_hw):
    B, C, HW = x.shape
    grid = (B, HW // tile_hw)                    # both axes fully parallel
    smem = pl.BlockSpec(memory_space=pltpu.MemorySpace.SMEM)
    return pl.pallas_call(
        _sampler_kernel,
        out_shape=jax.ShapeDtypeStruct((B, C, HW), jnp.float32),
        grid=grid,
        in_specs=[
            smem,                                                      # coef (3, T)
            smem,                                                      # seed (1,)
            pl.BlockSpec(bias.shape, lambda b, s: (0, 0, 0)),          # bias (T, C, 1)
            pl.BlockSpec(w_cols.shape, lambda b, s: (0, 0, 0)),        # w    (C, C, 1)
            pl.BlockSpec((1, C, tile_hw), lambda b, s: (b, 0, s)),     # x_T
        ],
        out_specs=pl.BlockSpec((1, C, tile_hw), lambda b, s: (b, 0, s)),
        compiler_params=pltpu.CompilerParams(
            dimension_semantics=("parallel", "parallel")),
    )(coef, seed, bias, w_cols, x)


class GaussianDiffusionSamplerPallas:
    """JAX/Pallas port of GaussianDiffusionSampler (mean_type='epsilon')."""

    def __init__(self, beta_1, beta_T, T, img_size=32, channels=4, seed=0):
        self.T = T
        self.img_size = img_size
        self.channels = channels

        # Buffers computed exactly as in the PyTorch __init__ (float64 math).
        betas = np.linspace(beta_1, beta_T, T, dtype=np.float64)
        alphas = 1.0 - betas
        alphas_bar = np.cumprod(alphas)
        alphas_bar_prev = np.concatenate([[1.0], alphas_bar])[:T]
        sigma_t = np.sqrt((1.0 - alphas_bar_prev) / (1.0 - alphas_bar) * betas)
        epsilon_coefficient = (1.0 - alphas) / np.sqrt(1.0 - alphas_bar)
        mean_coefficient = 1.0 / np.sqrt(alphas)

        coef = np.stack([mean_coefficient, epsilon_coefficient, sigma_t],
                        axis=0).astype(np.float32)              # (3, T), time order
        # Kernel loop index t walks time_step = T-1 ... 0: pre-reverse tables.
        self.coef_rev = jnp.asarray(coef[:, ::-1].copy())        # (3, T)

        # Deterministic synthetic eps-model parameters.
        key = jax.random.PRNGKey(seed)
        kw, kt = jax.random.split(key)
        c = channels
        self.temb_dim = 16
        w = jax.random.normal(kw, (c, c), jnp.float32) / np.sqrt(c)   # (C_in, C_out)
        self.w_cols = w[:, :, None]                                    # (C_in, C_out, 1)
        temb_proj = (jax.random.normal(kt, (self.temb_dim, c), jnp.float32)
                     / np.sqrt(self.temb_dim))

        # Precompute the full (T, C) time-bias table once (no per-step graphs).
        half = self.temb_dim // 2
        freqs = np.exp(-np.log(10000.0) * np.arange(half, dtype=np.float32) / half)
        ang = np.arange(T, dtype=np.float32)[:, None] * freqs[None, :]
        temb = np.concatenate([np.sin(ang), np.cos(ang)], axis=1)     # (T, temb_dim)
        bias = jnp.asarray(temb, jnp.float32) @ temb_proj             # (T, C)
        self.bias_rev = jnp.flip(bias, axis=0)[:, :, None]            # (T, C, 1)

    def __call__(self, x_T, noise_key):
        B, C, H, W = x_T.shape
        assert C == self.channels
        HW = H * W
        tile_hw = _pick_tile_hw(HW, B, C)
        # NCHW -> (B, C, H*W): pure reshape; lane axis = H*W (multiple of 128).
        x = x_T.reshape(B, C, HW).astype(jnp.float32)
        seed = jax.random.randint(noise_key, (1,), 0, jnp.iinfo(jnp.int32).max,
                                  dtype=jnp.int32)
        out = _run_sampler(self.coef_rev, seed, self.bias_rev, self.w_cols, x,
                           tile_hw=tile_hw)
        return out.reshape(B, C, H, W)


if __name__ == "__main__":
    B, C, H, W, T = 2, 4, 16, 16, 8
    key = jax.random.PRNGKey(0)
    k_x, k_noise = jax.random.split(key)
    x_T = jax.random.normal(k_x, (B, C, H, W), jnp.float32)

    sampler = GaussianDiffusionSamplerPallas(
        beta_1=1e-4, beta_T=0.02, T=T, img_size=H, channels=C, seed=0
    )
    x_0 = sampler(x_T, k_noise)
    jax.block_until_ready(x_0)

    assert x_0.shape == (B, C, H, W)
    assert bool(jnp.all(jnp.isfinite(x_0)))
    assert bool(jnp.all(x_0 <= 1.0)) and bool(jnp.all(x_0 >= -1.0))
    print("KERNEL_OK")
</pallas_src>

<mosaic_0001>
module attributes {stable_mosaic.version = 11 : i64} {
  func.func @_sampler_kernel(%arg0: i32, %arg1: i32, %arg2: memref<3x8xf32, #tpu.memory_space<smem>>, %arg3: memref<1xi32, #tpu.memory_space<smem>>, %arg4: memref<8x4x1xf32, #tpu.memory_space<vmem>>, %arg5: memref<4x4x1xf32, #tpu.memory_space<vmem>>, %arg6: memref<1x4x256xf32, #tpu.memory_space<vmem>>, %arg7: memref<1x4x256xf32, #tpu.memory_space<vmem>>) attributes {dimension_semantics = [#tpu.dimension_semantics<parallel>, #tpu.dimension_semantics<parallel>], iteration_bounds = array<i64: 2, 1>, scalar_prefetch = 0 : i64, scratch_operands = 0 : i64, tpu.core_type = #tpu.core_type<tc>, window_params = [{transform_indices = @transform_0, window_bounds = array<i64: 3, 8>}, {transform_indices = @transform_1, window_bounds = array<i64: 1>}, {pipeline_mode = #tpu.pipeline_mode<synchronous>, transform_indices = @transform_2, window_bounds = array<i64: 8, 4, 1>}, {pipeline_mode = #tpu.pipeline_mode<synchronous>, transform_indices = @transform_3, window_bounds = array<i64: 4, 4, 1>}, {transform_indices = @transform_4, window_bounds = array<i64: 1, 4, 256>}, {transform_indices = @transform_5, window_bounds = array<i64: 1, 4, 256>}]} {
    %c0 = arith.constant 0 : index
    %c0_0 = arith.constant 0 : index
    %c0_1 = arith.constant 0 : index
    %0 = vector.load %arg5[%c0, %c0_0, %c0_1] : memref<4x4x1xf32, #tpu.memory_space<vmem>>, vector<1x4x1xf32>
    %1 = vector.shape_cast %0 : vector<1x4x1xf32> to vector<4x1xf32>
    %c1 = arith.constant 1 : index
    %c0_2 = arith.constant 0 : index
    %c0_3 = arith.constant 0 : index
    %2 = vector.load %arg5[%c1, %c0_2, %c0_3] : memref<4x4x1xf32, #tpu.memory_space<vmem>>, vector<1x4x1xf32>
    %3 = vector.shape_cast %2 : vector<1x4x1xf32> to vector<4x1xf32>
    %c2 = arith.constant 2 : index
    %c0_4 = arith.constant 0 : index
    %c0_5 = arith.constant 0 : index
    %4 = vector.load %arg5[%c2, %c0_4, %c0_5] : memref<4x4x1xf32, #tpu.memory_space<vmem>>, vector<1x4x1xf32>
    %5 = vector.shape_cast %4 : vector<1x4x1xf32> to vector<4x1xf32>
    %c3 = arith.constant 3 : index
    %c0_6 = arith.constant 0 : index
    %c0_7 = arith.constant 0 : index
    %6 = vector.load %arg5[%c3, %c0_6, %c0_7] : memref<4x4x1xf32, #tpu.memory_space<vmem>>, vector<1x4x1xf32>
    %7 = vector.shape_cast %6 : vector<1x4x1xf32> to vector<4x1xf32>
    %c0_8 = arith.constant 0 : index
    %8 = memref.load %arg3[%c0_8] : memref<1xi32, #tpu.memory_space<smem>>
    %c16_i32 = arith.constant 16 : i32
    %9 = arith.shrsi %8, %c16_i32 : i32
    %c65535_i32 = arith.constant 65535 : i32
    %10 = arith.andi %9, %c65535_i32 : i32
    %11 = arith.xori %8, %10 : i32
    %c2146121005_i32 = arith.constant 2146121005 : i32
    %12 = arith.muli %11, %c2146121005_i32 : i32
    %c15_i32 = arith.constant 15 : i32
    %13 = arith.shrsi %12, %c15_i32 : i32
    %c131071_i32 = arith.constant 131071 : i32
    %14 = arith.andi %13, %c131071_i32 : i32
    %15 = arith.xori %12, %14 : i32
    %c-2073254261_i32 = arith.constant -2073254261 : i32
    %16 = arith.muli %15, %c-2073254261_i32 : i32
    %c16_i32_9 = arith.constant 16 : i32
    %17 = arith.shrsi %16, %c16_i32_9 : i32
    %c65535_i32_10 = arith.constant 65535 : i32
    %18 = arith.andi %17, %c65535_i32_10 : i32
    %19 = arith.xori %16, %18 : i32
    %c1_i32 = arith.constant 1 : i32
    %20 = arith.muli %arg0, %c1_i32 : i32
    %21 = arith.addi %20, %arg1 : i32
    %c1_i32_11 = arith.constant 1 : i32
    %22 = arith.addi %21, %c1_i32_11 : i32
    %c-1640531527_i32 = arith.constant -1640531527 : i32
    %23 = arith.muli %22, %c-1640531527_i32 : i32
    %24 = arith.xori %19, %23 : i32
    %c16_i32_12 = arith.constant 16 : i32
    %25 = arith.shrsi %24, %c16_i32_12 : i32
    %c65535_i32_13 = arith.constant 65535 : i32
    %26 = arith.andi %25, %c65535_i32_13 : i32
    %27 = arith.xori %24, %26 : i32
    %c2146121005_i32_14 = arith.constant 2146121005 : i32
    %28 = arith.muli %27, %c2146121005_i32_14 : i32
    %c15_i32_15 = arith.constant 15 : i32
    %29 = arith.shrsi %28, %c15_i32_15 : i32
    %c131071_i32_16 = arith.constant 131071 : i32
    %30 = arith.andi %29, %c131071_i32_16 : i32
    %31 = arith.xori %28, %30 : i32
    %c-2073254261_i32_17 = arith.constant -2073254261 : i32
    %32 = arith.muli %31, %c-2073254261_i32_17 : i32
    %c16_i32_18 = arith.constant 16 : i32
    %33 = arith.shrsi %32, %c16_i32_18 : i32
    %c65535_i32_19 = arith.constant 65535 : i32
    %34 = arith.andi %33, %c65535_i32_19 : i32
    %35 = arith.xori %32, %34 : i32
    %c0_20 = arith.constant 0 : index
    %c0_21 = arith.constant 0 : index
    %c0_22 = arith.constant 0 : index
    %36 = vector.load %arg6[%c0_20, %c0_21, %c0_22] : memref<1x4x256xf32, #tpu.memory_space<vmem>>, vector<1x4x256xf32>
    %37 = vector.shape_cast %36 : vector<1x4x256xf32> to vector<4x256xf32>
    %c0_i32 = arith.constant 0 : i32
    %c7_i32 = arith.constant 7 : i32
    %38 = arith.addi %c0_i32, %c7_i32 : i32
    %c1_i32_23 = arith.constant 1 : i32
    %39 = scf.for %arg8 = %c0_i32 to %38 step %c1_i32_23 iter_args(%arg9 = %37) -> (vector<4x256xf32>)  : i32 {
      %c2_35 = arith.constant 2 : index
      %78 = arith.index_cast %arg8 : i32 to index
      %79 = memref.load %arg2[%c2_35, %78] : memref<3x8xf32, #tpu.memory_space<smem>>
      %c1_i32_36 = arith.constant 1 : i32
      %80 = arith.addi %arg8, %c1_i32_36 : i32
      %c-2073254261_i32_37 = arith.constant -2073254261 : i32
      %81 = arith.muli %80, %c-2073254261_i32_37 : i32
      %82 = arith.xori %35, %81 : i32
      %c16_i32_38 = arith.constant 16 : i32
      %83 = arith.shrsi %82, %c16_i32_38 : i32
      %c65535_i32_39 = arith.constant 65535 : i32
      %84 = arith.andi %83, %c65535_i32_39 : i32
      %85 = arith.xori %82, %84 : i32
      %c2146121005_i32_40 = arith.constant 2146121005 : i32
      %86 = arith.muli %85, %c2146121005_i32_40 : i32
      %c15_i32_41 = arith.constant 15 : i32
      %87 = arith.shrsi %86, %c15_i32_41 : i32
      %c131071_i32_42 = arith.constant 131071 : i32
      %88 = arith.andi %87, %c131071_i32_42 : i32
      %89 = arith.xori %86, %88 : i32
      %c-2073254261_i32_43 = arith.constant -2073254261 : i32
      %90 = arith.muli %89, %c-2073254261_i32_43 : i32
      %c16_i32_44 = arith.constant 16 : i32
      %91 = arith.shrsi %90, %c16_i32_44 : i32
      %c65535_i32_45 = arith.constant 65535 : i32
      %92 = arith.andi %91, %c65535_i32_45 : i32
      %93 = arith.xori %90, %92 : i32
      %94 = tpu.iota {dimensions = array<i32: 0>} : vector<4x128xi32>
      %c128_i32 = arith.constant 128 : i32
      %95 = vector.broadcast %c128_i32 : i32 to vector<4x128xi32>
      %96 = arith.muli %94, %95 : vector<4x128xi32>
      %97 = tpu.iota {dimensions = array<i32: 1>} : vector<4x128xi32>
      %98 = arith.addi %96, %97 : vector<4x128xi32>
      %99 = vector.broadcast %93 : i32 to vector<4x128xi32>
      %100 = arith.xori %98, %99 : vector<4x128xi32>
      %c16_i32_46 = arith.constant 16 : i32
      %101 = vector.broadcast %c16_i32_46 : i32 to vector<4x128xi32>
      %102 = arith.shrsi %100, %101 : vector<4x128xi32>
      %c65535_i32_47 = arith.constant 65535 : i32
      %103 = vector.broadcast %c65535_i32_47 : i32 to vector<4x128xi32>
      %104 = arith.andi %102, %103 : vector<4x128xi32>
      %105 = arith.xori %100, %104 : vector<4x128xi32>
      %c2146121005_i32_48 = arith.constant 2146121005 : i32
      %106 = vector.broadcast %c2146121005_i32_48 : i32 to vector<4x128xi32>
      %107 = arith.muli %105, %106 : vector<4x128xi32>
      %c15_i32_49 = arith.constant 15 : i32
      %108 = vector.broadcast %c15_i32_49 : i32 to vector<4x128xi32>
      %109 = arith.shrsi %107, %108 : vector<4x128xi32>
      %c131071_i32_50 = arith.constant 131071 : i32
      %110 = vector.broadcast %c131071_i32_50 : i32 to vector<4x128xi32>
      %111 = arith.andi %109, %110 : vector<4x128xi32>
      %112 = arith.xori %107, %111 : vector<4x128xi32>
      %c-2073254261_i32_51 = arith.constant -2073254261 : i32
      %113 = vector.broadcast %c-2073254261_i32_51 : i32 to vector<4x128xi32>
      %114 = arith.muli %112, %113 : vector<4x128xi32>
      %c16_i32_52 = arith.constant 16 : i32
      %115 = vector.broadcast %c16_i32_52 : i32 to vector<4x128xi32>
      %116 = arith.shrsi %114, %115 : vector<4x128xi32>
      %c65535_i32_53 = arith.constant 65535 : i32
      %117 = vector.broadcast %c65535_i32_53 : i32 to vector<4x128xi32>
      %118 = arith.andi %116, %117 : vector<4x128xi32>
      %119 = arith.xori %114, %118 : vector<4x128xi32>
      %c-1640531527_i32_54 = arith.constant -1640531527 : i32
      %120 = vector.broadcast %c-1640531527_i32_54 : i32 to vector<4x128xi32>
      %121 = arith.xori %119, %120 : vector<4x128xi32>
      %c16_i32_55 = arith.constant 16 : i32
      %122 = vector.broadcast %c16_i32_55 : i32 to vector<4x128xi32>
      %123 = arith.shrsi %121, %122 : vector<4x128xi32>
      %c65535_i32_56 = arith.constant 65535 : i32
      %124 = vector.broadcast %c65535_i32_56 : i32 to vector<4x128xi32>
      %125 = arith.andi %123, %124 : vector<4x128xi32>
      %126 = arith.xori %121, %125 : vector<4x128xi32>
      %c2146121005_i32_57 = arith.constant 2146121005 : i32
      %127 = vector.broadcast %c2146121005_i32_57 : i32 to vector<4x128xi32>
      %128 = arith.muli %126, %127 : vector<4x128xi32>
      %c15_i32_58 = arith.constant 15 : i32
      %129 = vector.broadcast %c15_i32_58 : i32 to vector<4x128xi32>
      %130 = arith.shrsi %128, %129 : vector<4x128xi32>
      %c131071_i32_59 = arith.constant 131071 : i32
      %131 = vector.broadcast %c131071_i32_59 : i32 to vector<4x128xi32>
      %132 = arith.andi %130, %131 : vector<4x128xi32>
      %133 = arith.xori %128, %132 : vector<4x128xi32>
      %c-2073254261_i32_60 = arith.constant -2073254261 : i32
      %134 = vector.broadcast %c-2073254261_i32_60 : i32 to vector<4x128xi32>
      %135 = arith.muli %133, %134 : vector<4x128xi32>
      %c16_i32_61 = arith.constant 16 : i32
      %136 = vector.broadcast %c16_i32_61 : i32 to vector<4x128xi32>
      %137 = arith.shrsi %135, %136 : vector<4x128xi32>
      %c65535_i32_62 = arith.constant 65535 : i32
      %138 = vector.broadcast %c65535_i32_62 : i32 to vector<4x128xi32>
      %139 = arith.andi %137, %138 : vector<4x128xi32>
      %140 = arith.xori %135, %139 : vector<4x128xi32>
      %c9_i32 = arith.constant 9 : i32
      %141 = vector.broadcast %c9_i32 : i32 to vector<4x128xi32>
      %142 = arith.shrsi %119, %141 : vector<4x128xi32>
      %c8388607_i32 = arith.constant 8388607 : i32
      %143 = vector.broadcast %c8388607_i32 : i32 to vector<4x128xi32>
      %144 = arith.andi %142, %143 : vector<4x128xi32>
      %c1065353216_i32 = arith.constant 1065353216 : i32
      %145 = vector.broadcast %c1065353216_i32 : i32 to vector<4x128xi32>
      %146 = arith.ori %144, %145 : vector<4x128xi32>
      %147 = tpu.bitcast %146 : vector<4x128xi32> -> vector<4x128xf32>
      %cst_63 = arith.constant 2.000000e+00 : f32
      %148 = vector.broadcast %cst_63 : f32 to vector<4x128xf32>
      %149 = arith.subf %148, %147 : vector<4x128xf32>
      %c9_i32_64 = arith.constant 9 : i32
      %150 = vector.broadcast %c9_i32_64 : i32 to vector<4x128xi32>
      %151 = arith.shrsi %140, %150 : vector<4x128xi32>
      %c8388607_i32_65 = arith.constant 8388607 : i32
      %152 = vector.broadcast %c8388607_i32_65 : i32 to vector<4x128xi32>
      %153 = arith.andi %151, %152 : vector<4x128xi32>
      %c1065353216_i32_66 = arith.constant 1065353216 : i32
      %154 = vector.broadcast %c1065353216_i32_66 : i32 to vector<4x128xi32>
      %155 = arith.ori %153, %154 : vector<4x128xi32>
      %156 = tpu.bitcast %155 : vector<4x128xi32> -> vector<4x128xf32>
      %cst_67 = arith.constant 1.000000e+00 : f32
      %157 = vector.broadcast %cst_67 : f32 to vector<4x128xf32>
      %158 = arith.subf %156, %157 : vector<4x128xf32>
      %159 = math.log %149 : vector<4x128xf32>
      %cst_68 = arith.constant -2.000000e+00 : f32
      %160 = vector.broadcast %cst_68 : f32 to vector<4x128xf32>
      %161 = arith.mulf %160, %159 : vector<4x128xf32>
      %162 = math.sqrt %161 : vector<4x128xf32>
      %cst_69 = arith.constant 6.28318548 : f32
      %163 = vector.broadcast %cst_69 : f32 to vector<4x128xf32>
      %164 = arith.mulf %163, %158 : vector<4x128xf32>
      %165 = math.cos %164 : vector<4x128xf32>
      %166 = arith.mulf %162, %165 : vector<4x128xf32>
      %167 = math.sin %164 : vector<4x128xf32>
      %168 = arith.mulf %162, %167 : vector<4x128xf32>
      %169 = tpu.concatenate %166, %168 in 1 : vector<4x128xf32>, vector<4x128xf32> -> vector<4x256xf32>
      %c0_70 = arith.constant 0 : index
      %170 = arith.index_cast %arg8 : i32 to index
      %171 = memref.load %arg2[%c0_70, %170] : memref<3x8xf32, #tpu.memory_space<smem>>
      %c1_71 = arith.constant 1 : index
      %172 = arith.index_cast %arg8 : i32 to index
      %173 = memref.load %arg2[%c1_71, %172] : memref<3x8xf32, #tpu.memory_space<smem>>
      %174 = vector.extract_strided_slice %arg9 {offsets = [0, 0], sizes = [1, 256], strides = [1, 1]} : vector<4x256xf32> to vector<1x256xf32>
      %175 = vector.broadcast %1 : vector<4x1xf32> to vector<4x256xf32>
      %176 = vector.broadcast %174 : vector<1x256xf32> to vector<4x256xf32>
      %177 = arith.mulf %175, %176 : vector<4x256xf32>
      %178 = vector.extract_strided_slice %arg9 {offsets = [1, 0], sizes = [1, 256], strides = [1, 1]} : vector<4x256xf32> to vector<1x256xf32>
      %179 = vector.broadcast %3 : vector<4x1xf32> to vector<4x256xf32>
      %180 = vector.broadcast %178 : vector<1x256xf32> to vector<4x256xf32>
      %181 = arith.mulf %179, %180 : vector<4x256xf32>
      %182 = arith.addf %177, %181 : vector<4x256xf32>
      %183 = vector.extract_strided_slice %arg9 {offsets = [2, 0], sizes = [1, 256], strides = [1, 1]} : vector<4x256xf32> to vector<1x256xf32>
      %184 = vector.broadcast %5 : vector<4x1xf32> to vector<4x256xf32>
      %185 = vector.broadcast %183 : vector<1x256xf32> to vector<4x256xf32>
      %186 = arith.mulf %184, %185 : vector<4x256xf32>
      %187 = arith.addf %182, %186 : vector<4x256xf32>
      %188 = vector.extract_strided_slice %arg9 {offsets = [3, 0], sizes = [1, 256], strides = [1, 1]} : vector<4x256xf32> to vector<1x256xf32>
      %189 = vector.broadcast %7 : vector<4x1xf32> to vector<4x256xf32>
      %190 = vector.broadcast %188 : vector<1x256xf32> to vector<4x256xf32>
      %191 = arith.mulf %189, %190 : vector<4x256xf32>
      %192 = arith.addf %187, %191 : vector<4x256xf32>
      %193 = arith.index_cast %arg8 : i32 to index
      %c0_72 = arith.constant 0 : index
      %c0_73 = arith.constant 0 : index
      %194 = vector.load %arg4[%193, %c0_72, %c0_73] : memref<8x4x1xf32, #tpu.memory_space<vmem>>, vector<1x4x1xf32>
      %195 = vector.shape_cast %194 : vector<1x4x1xf32> to vector<4x1xf32>
      %196 = vector.broadcast %195 : vector<4x1xf32> to vector<4x256xf32>
      %197 = arith.addf %192, %196 : vector<4x256xf32>
      %198 = math.tanh %197 : vector<4x256xf32>
      %199 = vector.broadcast %173 : f32 to vector<4x256xf32>
      %200 = arith.mulf %199, %198 : vector<4x256xf32>
      %201 = arith.subf %arg9, %200 : vector<4x256xf32>
      %202 = vector.broadcast %171 : f32 to vector<4x256xf32>
      %203 = arith.mulf %202, %201 : vector<4x256xf32>
      %204 = vector.broadcast %79 : f32 to vector<4x256xf32>
      %205 = arith.mulf %204, %169 : vector<4x256xf32>
      %206 = arith.addf %203, %205 : vector<4x256xf32>
      scf.yield %206 : vector<4x256xf32>
    }
    %c7_i32_24 = arith.constant 7 : i32
    %c0_25 = arith.constant 0 : index
    %c7 = arith.constant 7 : index
    %40 = memref.load %arg2[%c0_25, %c7] : memref<3x8xf32, #tpu.memory_space<smem>>
    %c1_26 = arith.constant 1 : index
    %c7_27 = arith.constant 7 : index
    %41 = memref.load %arg2[%c1_26, %c7_27] : memref<3x8xf32, #tpu.memory_space<smem>>
    %42 = vector.extract_strided_slice %39 {offsets = [0, 0], sizes = [1, 256], strides = [1, 1]} : vector<4x256xf32> to vector<1x256xf32>
    %43 = vector.broadcast %1 : vector<4x1xf32> to vector<4x256xf32>
    %44 = vector.broadcast %42 : vector<1x256xf32> to vector<4x256xf32>
    %45 = arith.mulf %43, %44 : vector<4x256xf32>
    %46 = vector.extract_strided_slice %39 {offsets = [1, 0], sizes = [1, 256], strides = [1, 1]} : vector<4x256xf32> to vector<1x256xf32>
    %47 = vector.broadcast %3 : vector<4x1xf32> to vector<4x256xf32>
    %48 = vector.broadcast %46 : vector<1x256xf32> to vector<4x256xf32>
    %49 = arith.mulf %47, %48 : vector<4x256xf32>
    %50 = arith.addf %45, %49 : vector<4x256xf32>
    %51 = vector.extract_strided_slice %39 {offsets = [2, 0], sizes = [1, 256], strides = [1, 1]} : vector<4x256xf32> to vector<1x256xf32>
    %52 = vector.broadcast %5 : vector<4x1xf32> to vector<4x256xf32>
    %53 = vector.broadcast %51 : vector<1x256xf32> to vector<4x256xf32>
    %54 = arith.mulf %52, %53 : vector<4x256xf32>
    %55 = arith.addf %50, %54 : vector<4x256xf32>
    %56 = vector.extract_strided_slice %39 {offsets = [3, 0], sizes = [1, 256], strides = [1, 1]} : vector<4x256xf32> to vector<1x256xf32>
    %57 = vector.broadcast %7 : vector<4x1xf32> to vector<4x256xf32>
    %58 = vector.broadcast %56 : vector<1x256xf32> to vector<4x256xf32>
    %59 = arith.mulf %57, %58 : vector<4x256xf32>
    %60 = arith.addf %55, %59 : vector<4x256xf32>
    %c7_28 = arith.constant 7 : index
    %c0_29 = arith.constant 0 : index
    %c0_30 = arith.constant 0 : index
    %61 = vector.load %arg4[%c7_28, %c0_29, %c0_30] : memref<8x4x1xf32, #tpu.memory_space<vmem>>, vector<1x4x1xf32>
    %62 = vector.shape_cast %61 : vector<1x4x1xf32> to vector<4x1xf32>
    %63 = vector.broadcast %62 : vector<4x1xf32> to vector<4x256xf32>
    %64 = arith.addf %60, %63 : vector<4x256xf32>
    %65 = math.tanh %64 : vector<4x256xf32>
    %66 = vector.broadcast %41 : f32 to vector<4x256xf32>
    %67 = arith.mulf %66, %65 : vector<4x256xf32>
    %68 = arith.subf %39, %67 : vector<4x256xf32>
    %69 = vector.broadcast %40 : f32 to vector<4x256xf32>
    %70 = arith.mulf %69, %68 : vector<4x256xf32>
    %cst = arith.constant -1.000000e+00 : f32
    %cst_31 = arith.constant 1.000000e+00 : f32
    %71 = vector.broadcast %cst : f32 to vector<4x256xf32>
    %72 = arith.maximumf %71, %70 : vector<4x256xf32>
    %73 = vector.broadcast %cst_31 : f32 to vector<4x256xf32>
    %74 = arith.minimumf %73, %72 : vector<4x256xf32>
    %c0_32 = arith.constant 0 : index
    %c0_33 = arith.constant 0 : index
    %c0_34 = arith.constant 0 : index
    %75 = vector.load %arg7[%c0_32, %c0_33, %c0_34] : memref<1x4x256xf32, #tpu.memory_space<vmem>>, vector<1x4x256xf32>
    %76 = vector.shape_cast %75 : vector<1x4x256xf32> to vector<4x256xf32>
    %77 = vector.shape_cast %74 : vector<4x256xf32> to vector<1x4x256xf32>
    tpu.vector_store %arg7[%c0_32, %c0_33, %c0_34], %77 {strides = array<i32>} : memref<1x4x256xf32, #tpu.memory_space<vmem>>, vector<1x4x256xf32>,
    return
  }
  func.func @transform_0(%arg0: i32, %arg1: i32) -> (i32, i32) {
    %c0_i32 = arith.constant 0 : i32
    %c0_i32_0 = arith.constant 0 : i32
    %c0_i32_1 = arith.constant 0 : i32
    return %c0_i32, %c0_i32_0 : i32, i32
  }
  func.func @transform_1(%arg0: i32, %arg1: i32) -> i32 {
    %c0_i32 = arith.constant 0 : i32
    %c0_i32_0 = arith.constant 0 : i32
    return %c0_i32 : i32
  }
  func.func @transform_2(%arg0: i32, %arg1: i32) -> (i32, i32, i32) {
    %c0_i32 = arith.constant 0 : i32
    %c0_i32_0 = arith.constant 0 : i32
    %c0_i32_1 = arith.constant 0 : i32
    %c0_i32_2 = arith.constant 0 : i32
    return %c0_i32, %c0_i32_0, %c0_i32_1 : i32, i32, i32
  }
  func.func @transform_3(%arg0: i32, %arg1: i32) -> (i32, i32, i32) {
    %c0_i32 = arith.constant 0 : i32
    %c0_i32_0 = arith.constant 0 : i32
    %c0_i32_1 = arith.constant 0 : i32
    %c0_i32_2 = arith.constant 0 : i32
    return %c0_i32, %c0_i32_0, %c0_i32_1 : i32, i32, i32
  }
  func.func @transform_4(%arg0: i32, %arg1: i32) -> (i32, i32, i32) {
    %c0_i32 = arith.constant 0 : i32
    %c0_i32_0 = arith.constant 0 : i32
    return %arg0, %c0_i32, %arg1 : i32, i32, i32
  }
  func.func @transform_5(%arg0: i32, %arg1: i32) -> (i32, i32, i32) {
    %c0_i32 = arith.constant 0 : i32
    %c0_i32_0 = arith.constant 0 : i32
    return %arg0, %c0_i32, %arg1 : i32, i32, i32
  }
}

</mosaic_0001>

<bundles_post_ra>
// kernel: _run_sampler.1
= control target key start
LH: loop header
LB: loop body
LE: loop exit
PB: predicated region body
PF: predicated region fallthrough
CT: control target
= control target key end

     0   :  { %s1627_s0 = inlined_call_operand.vmem [shape: f32[3,8], index: 0, kind: input, shape index: {}]   ;;  %s1628_s1 = inlined_call_operand.<no memory space> [shape: s32[1], index: 1, kind: input, shape index: {}]   ;;  %s1629_s2 = inlined_call_operand.vmem [shape: f32[8,4,1], index: 2, kind: input, shape index: {}]   ;;  %s1630_s3 = inlined_call_operand.vmem [shape: f32[4,4,1], index: 3, kind: input, shape index: {}]   ;;  %s1631_s4 = inlined_call_operand.vmem [shape: f32[2,4,256], index: 4, kind: input, shape index: {}]   ;;  %s1632_s5 = inlined_call_operand.hbm [shape: f32[2,4,256], index: 5, kind: output, shape index: {}]  }
   0x1   :  { %1637 = sst [smem:[#allocation13_spill]] %s1627_s0 }
   0x2   :  { %1638 = sst [smem:[#allocation14_spill]] %s1630_s3 }
   0x3   :  { %10 = sst [smem:[#allocation2]] %s1628_s1 }
   0x4   :  { %11 = vsyncpa [#allocation5], 0 }
   0x5   :  { %12 = vsyncpa [#allocation4], 0 }
   0x6   :  { %14 = vsyncpa [#allocation4 + $0x1], 0  ;;  %s1304_s20 = smov 0   ;;  %s1306_s21 = smov 0  }
   0x7   :  { %s1308_s22 = smov 0   ;;  %s1310_s23 = smov 0  }
   0x8   :  { %s1312_s24 = smov 0   ;;  %s1314_s25 = smov 0  }
   0x9 LB: > { %1639 = sst [smem:[#allocation9_spill]] %s1239_s22  ;;  %s984_s1 = sadd.s32 4294967295, %s1251_s25   ;;  %s1251_s25 = sphi %s1314_s25, %s20_s25   ;;  %s1247_s24 = sphi %s1312_s24, %s1655_s24   ;;  %s1243_s23 = sphi %s1310_s23, %s1654_s23   ;;  %s1239_s22 = sphi %s1308_s22, %s1653_s22   ;;  %s1235_s21 = sphi %s1306_s21, %s1657_s21   ;;  %s1231_s20 = sphi %s1304_s20, %s1656_s20  }
   0xa   : > { %1640 = sst [smem:[#allocation10_spill]] %s1247_s24  ;;  %s985_s26 = sadd.s32 4294967294, %s1251_s25  }
   0xb   : > { %s32_s27 = sadd.s32 1, %s1247_s24  ;;  %s153_s28 = sadd.s32 1, %s1239_s22 }
   0xc   : > { %p34_p0 = scmp.ge.s32.totalorder %s32_s27, 2  ;;  %p163_p1 = scmp.ne.s32.totalorder %s1239_s22, %s1235_s21 }
   0xd   : > { %p164_p2 = scmp.eq.s32.totalorder %s984_s1, 1  ;;  %p169_p3 = scmp.ne.s32.totalorder %s1235_s21, %s1231_s20 }
   0xe   : > { %s1659_s27 = smov (%p34_p0, %s32_s27), 0  ;;  %p170_p5 = scmp.eq.s32.totalorder %s985_s26, 1 }
   0xf   : > { %1641 = sst [smem:[#allocation11_spill]] %s1659_s27  ;;  %p1344_p4 = por %p164_p2, %p163_p1 }
  0x10   : > { %s148_s30 = ssub.s32 %s1247_s24, %s1659_s27  ;;  %p986_p6 = scmp.ge.s32.totalorder %s1251_s25, 1 }
  0x11   : > { %p151_p7 = scmp.eq.s32.totalorder %s148_s30, 0  ;;  %p1351_p8 = por %p170_p5, %p169_p3 }
  0x12   : > { %p177_p9 = scmp.lt.s32.totalorder %s1251_s25, 3  ;;  %p1363_p11 = scmp.eq.s32.totalorder %s984_s1, 0 }
  0x13   : > { %s1357_s7 = scalar_select %p151_p7, %s1239_s22, %s153_s28  }
  0x14   : > { %p1359_p10 = pnand %p986_p6, %p177_p9  ;;  %s1647_s0 = sld [smem:[#allocation13_spill]] }
  0x15   : > { %1644 = sst [smem:[#allocation12_spill]] %s1357_s7 }
  0x16   : > { %p1042_p12 = pneg %p1359_p10 }
  0x18   : > { %p1043_p13 = pnand %p1363_p11, %p1042_p12 }
  0x1a   : > { %s190_s12 = sshll.u32 %s1647_s0, 4  ;;  %p1148_p1 = pneg %p1043_p13  ;;  %s191_s12 = int_to_ptr.vmem [resolvable:$true] %s190_s12 }
  0x1b   : > { %s1146_s13 = scalar_lea.vmem %s191_s12, 64  ;;  %p1154_p5 = scmp.lt.s32.totalorder %s191_s12, %s191_s12 }
  0x1c   : > { %p1147_p0 = scmp.ne.s32.totalorder %s191_s12, %s1146_s13  ;;  %p1155_p6 = scmp.lt.s32.totalorder %s1146_s13, %s1146_s13 }
  0x1e   : > { %p1149_p2 = pnand %p1148_p1, %p1147_p0  ;;  %p1156_p7 = por %p1155_p6, %p1154_p5 }
  0x20   : > { %p1150_p3 = pneg %p1149_p2 }
  0x22   : > { %p1157_p9 = pnand %p1156_p7, %p1150_p3 }
  0x24   : > { %1160 = shalt.err (!%p1157_p9)
}
  0x25   : > { %s1261_s14 = smov [#allocation3]   ;;  %225 = sbr.rel (%p1359_p10) target bundleno = 416 (0x1a0), region = 40 }
  0x26   : > { %1045 = dma.vmem_to_smem (!%p1043_p13), %s191_s12, 64, %s1261_s14, [#allocation5]  }
  0x2c   : > { %1222 = dma.done.wait (%p1363_p11), [#allocation5], 64  }
  0x2d   : > { %1224 = vsyncadd (%p1363_p11), [#allocation5], 4294967232 }
  0x2e   : > { %231 = sfence }
  0x2f   : > { %s1633_s15 = sand.u32 1, %s1235_s21   ;;  %p259_p12 = scmp.lt.s32.totalorder %s1243_s23, 1 }
  0x30   : > { %s1648_s3 = sld [smem:[#allocation14_spill]]  ;;  %s1394_s1 = sshll.u32 %s1633_s15, 3 }
  0x31   : > { %s276_s9 = sld [smem:[#allocation2]]  ;;  %s289_s15 = sadd.s32 1, %s1243_s23 }
  0x32   : > { %s260_s10 = scalar_select %p259_p12, %s1243_s23, 1 }
  0x33   : > { %s290_s30 = smul.u32 2654435769, %s289_s15  ;;  %s257_s15 = scalar_lea.vmem [#allocation6], %s1394_s1 }
  0x34   : > { %s1026_s11 = sshll.u32 %s260_s10, 3 }
  0x35   : > { %s266_s14 = scalar_lea.vmem %s1631_s4, %s1026_s11 }
  0x36   : > { %v1385_v0 = vld [vmem:[%s1648_s3] sm:$0xf]  ;;  %v1390_v1 = vld [vmem:[%s1648_s3 + $0x4] sm:$0xf]  ;;  %v1399_v2 = vld [vmem:[%s1648_s3 + $0x8] sm:$0xf] }
  0x37   : > { %v1404_v3 = vld [vmem:[%s1648_s3 + $0xc] sm:$0xf]  ;;  %v303_v4 = vld [vmem:[%s266_s14] sm:$0xff]   ;;  %s277_s16 = sshra.s32 %s276_s9, 16 }
  0x38   : > { %s278_s17 = sand.u32 65535, %s277_s16 }
  0x39   : > { %s279_s18 = sxor.u32 %s278_s17, %s276_s9 }
  0x3a   : > { %s280_s19 = smul.u32 2146121005, %s279_s18 }
  0x3c   : > { %s281_s26 = sshra.s32 %s280_s19, 15 }
  0x3d   : > { %s282_s28 = sand.u32 131071, %s281_s26 }
  0x3e   : > { %s283_s0 = sxor.u32 %s282_s28, %s280_s19 }
  0x3f   : > { %s284_s27 = smul.u32 2221713035, %s283_s0 }
  0x41   : > { %s285_s8 = sshra.s32 %s284_s27, 16 }
  0x42   : > { %s286_s3 = sand.u32 65535, %s285_s8 }
  0x43   : > { %s287_s24 = sxor.u32 %s286_s3, %s284_s27  ;;  %s1421_s3 = smov 0  }
  0x44   : > { %s291_s10 = sxor.u32 %s290_s30, %s287_s24 }
  0x45   : > { %s292_s7 = sshra.s32 %s291_s10, 16 }
  0x46   : > { %s293_s22 = sand.u32 65535, %s292_s7 }
  0x47   : > { %s294_s12 = sxor.u32 %s293_s22, %s291_s10 }
  0x48   : > { %s295_s11 = smul.u32 2146121005, %s294_s12 }
  0x4a   : > { %s296_s13 = sshra.s32 %s295_s11, 15 }
  0x4b   : > { %s297_s14 = sand.u32 131071, %s296_s13 }
  0x4c   : > { %s298_s16 = sxor.u32 %s297_s14, %s295_s11 }
  0x4d   : > { %s1411_s9 = smul.u32 2221713035, %s298_s16 }
  0x4f   : > { %s300_s17 = sshra.s32 %s1411_s9, 16 }
  0x50   : > { %s1414_s18 = sand.u32 65535, %s300_s17 }
  0x51   : > { %s302_s0 = sxor.u32 %s1414_s18, %s1411_s9 }
  0x52 LB: >> { %v1262_v5 = vmov 0   ;;  %s1016_s22 = sshll.u32 %s1259_s3, 2  ;;  %s1436_s19 = sadd.s32 1, %s1259_s3   ;;  %v333_v6 = vlaneseq  ;;  %v1263_v46 = vmov 683565275   ;;  %s1259_s3 = sphi %s1421_s3, %s1650_s3   ;;  %v1255_v4 = vphi %v303_v4, %v1649_v4  }
  0x53   : >> { %1127 = vset.pattern.permute.xlu1 %v1262_v5  ;;  %1126 = vset.pattern.permute.xlu0 %v1262_v5  ;;  %s707_s7 = scalar_lea.vmem %s1629_s2, %s1016_s22  ;;  %s320_s26 = smul.u32 2221713035, %s1436_s19  ;;  %v1264_v48 = vmov 2475754826   ;;  %v1265_v50 = vmov 2131351028  }
  0x54   : >> { %654 = vperm.xlu1 %1127, %v1399_v2   ;;  %601 = vperm.xlu0 %1126, %v1385_v0   ;;  %v708_v7 = vld [vmem:[%s707_s7] sm:$0xf]  ;;  %v1444_v8 = vshrl.u32 %v333_v6, 7  ;;  %v337_v10 = vand.u32 127, %v333_v6  ;;  %v1266_v52 = vmov 2102212464  }
  0x55   : >> { %s321_s28 = sxor.u32 %s320_s26, %s302_s0  ;;  %v1267_v54 = vmov 920167782   ;;  %v1268_v61 = vmov 1326507024   ;;  %s311_s27 = sshra.s32 %s1259_s3, 7 }
  0x56   : >> { %s322_s30 = sshra.s32 %s321_s28, 16  ;;  %v335_v9 = vmul.u32 128, %v1444_v8  ;;  %s1517_s7 = sshll.u32 %s311_s27, 7 }
  0x57   : >> { %s323_s8 = sand.u32 65535, %s322_s30  ;;  %s1028_s26 = sadd.s32 256, %s1517_s7 }
  0x58   : >> { %681 = vperm.xlu1 %1127, %v1404_v3   ;;  %627 = vperm.xlu0 %1126, %v1390_v1   ;;  %s324_s10 = sxor.u32 %s323_s8, %s321_s28  ;;  %v338_v11 = vadd.s32 %v337_v10, %v335_v9  ;;  %s316_s28 = sand.u32 127, %s1259_s3 }
  0x59   : >> { %s325_s12 = smul.u32 2146121005, %s324_s10  ;;  %s317_s30 = sadd.s32 %s1028_s26, %s316_s28 }
  0x5a   : >> { %s1030_s8 = sadd.s32 128, %s1517_s7  ;;  %s1525_s10 = sld [smem:[#allocation3 + %s317_s30]] }
  0x5b   : >> { %s326_s11 = sshra.s32 %s325_s12, 15  ;;  %p306_p10 = scmp.ge.s32.totalorder %s1436_s19, 7  }
  0x5c   : >> { %711 = vperm.xlu0 %1126, %v708_v7   ;;  %s327_s13 = sand.u32 131071, %s326_s11  ;;  %s1018_s9 = sld [smem:[#allocation3 + $0x87]] (%p306_p10) }
  0x5d   : >> { %s328_s14 = sxor.u32 %s327_s13, %s325_s12  ;;  %s597_s12 = sadd.s32 %s1030_s8, %s316_s28 }
  0x5e   : >> { %s329_s16 = smul.u32 2221713035, %s328_s14  ;;  %s598_s11 = sld [smem:[#allocation3 + %s597_s12]] }
  0x5f   : >> { %s594_s13 = sld [smem:[#allocation3 + %s1259_s3]]  ;;  %s1650_s3 = smov %s1436_s19 }
  0x60   : >> { %s330_s17 = sshra.s32 %s329_s16, 16  ;;  %s1017_s18 = sld [smem:[#allocation3 + $0x7]] (%p306_p10) }
  0x61   : >> { %s331_s22 = sand.u32 65535, %s330_s17  ;;  %s1031_s0 = sshll.u32 (%p306_p10), %s1243_s23, 7 }
  0x62   : >> { %s332_s24 = sxor.u32 %s331_s22, %s329_s16  ;;  %s886_s19 = sshll.u32 (%p306_p10), %s257_s15, 4  ;;  %s1578_s19 = int_to_ptr.vmem [resolvable:$true] %s886_s19 }
  0x63   : >> { %v339_v12 = vstv %s332_s24  ;;  %s1576_s22 = scalar_lea.hbm (%p306_p10), %s1632_s5, %s1031_s0  ;;  %s1651_s24 = sand.u32 (%p306_p10), 1, %s1235_s21  }
  0x64   : >> { %v340_v13 = vxor.u32 %v339_v12, %v338_v11  ;;  %s870_s27 = scalar_lea.sflag (%p306_p10), [#allocation4], %s1651_s24  ;;  %s1161_s7 = scalar_lea.vmem (%p306_p10), %s1578_s19, 128 }
  0x65   : > { %p1162_p11 = scmp.ne.s32.totalorder (%p306_p10), %s1578_s19, %s1161_s7  ;;  %s1270_s23 = smov (%p306_p10), [#allocation6]  }
  0x66   : >> { %v998_v14 = vshrl.u32 %v340_v13, 16  ;;  %s1165_s26 = sshll.u32 (%p306_p10), %s1270_s23, 4  ;;  %s1166_s26 = int_to_ptr.vmem [resolvable:$false] %s1165_s26 }
  0x67   : > { %p1163_p13 = pnand (%p306_p10), %p1162_p11, %p1344_p4  ;;  %s1167_s28 = scalar_lea.vmem (%p306_p10), %s1166_s26, 256 }
  0x68   : >> { %v343_v15 = vxor.u32 %v998_v14, %v340_v13  ;;  %p1168_p1 = scmp.lt.s32.totalorder (%p306_p10), %s1578_s19, %s1166_s26  ;;  %p1169_p2 = scmp.lt.s32.totalorder (%p306_p10), %s1167_s28, %s1161_s7 }
  0x69   : > { %p1164_p0 = pneg (%p306_p10), %p1163_p13 }
  0x6a   : >> { %v344_v16 = vmul.u32 2146121005, %v343_v15  ;;  %p1170_p3 = por (%p306_p10), %p1169_p2, %p1168_p1 }
  0x6c   : >> { %v999_v17 = vshrl.u32 %v344_v16, 15  ;;  %p1171_p5 = pnand (%p306_p10), %p1170_p3, %p1164_p0 }
  0x6e   : >> { %v347_v18 = vxor.u32 %v999_v17, %v344_v16 }
  0x70   : >> { %v348_v19 = vmul.u32 2221713035, %v347_v18 }
  0x72   : >> { %v1000_v20 = vshrl.u32 %v348_v19, 16 }
  0x74   : >> { %v1447_v21 = vxor.u32 %v1000_v20, %v348_v19 }
  0x76   : >> { %v352_v22 = vxor.u32 2654435769, %v1447_v21 }
  0x78   : >> { %v1001_v23 = vshrl.u32 %v352_v22, 16 }
  0x7a   : >> { %v355_v24 = vxor.u32 %v1001_v23, %v352_v22 }
  0x7c   : >> { %v356_v25 = vmul.u32 2146121005, %v355_v24 }
  0x7e   : >> { %v1002_v26 = vshrl.u32 %v356_v25, 15 }
  0x80   : >> { %v359_v27 = vxor.u32 %v1002_v26, %v356_v25 }
  0x82   : >> { %v360_v28 = vmul.u32 2221713035, %v359_v27 }
  0x84   : >> { %v1003_v29 = vshrl.u32 %v360_v28, 16 }
  0x86   : >> { %v363_v30 = vxor.u32 %v1003_v29, %v360_v28  ;;  %v1004_v29 = vshrl.u32 %v1447_v21, 9 }
  0x88   : >> { %v1005_v31 = vshrl.u32 %v363_v30, 9 }
  0x8a   : >> { %v371_v32 = vor.u32 1065353216, %v1005_v31 }
  0x8c   : >> { %v1006_v33 = vadd.f32 -1.0, %v371_v32 }
  0x8e   : >> { %v1450_v34 = vmul.f32 6.2831855, %v1006_v33  ;;  %v366_v33 = vor.u32 1065353216, %v1004_v29 }
  0x90   : >> { %v388_v35 = vand.u32 2139095040, %v1450_v34  ;;  %v385_v37 = vand.u32 2147483647, %v1450_v34  ;;  %vm387_vm7 = vcmp.lt.s32.totalorder %v1450_v34, 0 }
  0x92   : >> { %v389_v36 = vshrl.u32 %v388_v35, 23  ;;  %v392_v40 = vand.u32 8388607, %v385_v37  ;;  %vm386_vm8 = vcmp.le.f32.partialorder %v385_v37, 0.7853982 }
  0x94   : >> { %v1007_v38 = vadd.s32 4294967169, %v389_v36  ;;  %v393_v43 = vor.u32 8388608, %v392_v40 }
  0x96   : >> { %v395_v39 = vadd.s32 1, %v1007_v38  ;;  %v433_v63 = vshll.u32 %v393_v43, 8  ;;  %v368_v38 = vsub.f32 2.0, %v366_v33 }
  0x98   : >> { %vm396_vm0 = vcmp.gt.s32.totalorder %v395_v39, 0  ;;  %1128 = vlog2.f32 %v368_v38 }
  0x99   : >> { %v397_v41 = vsel %vm396_vm0, %v395_v39, 0 }
  0x9a   : >> { %v399_v42 = vand.u32 31, %v397_v41  ;;  %v398_v44 = vshrl.u32 %v397_v41, 5 }
  0x9c   : >> { %v400_v45 = vsub.s32 32, %v399_v42  ;;  %v402_v47 = vshll.u32 %v1263_v46, %v399_v42  ;;  %v405_v49 = vshll.u32 %v1264_v48, %v399_v42  ;;  %v408_v51 = vshll.u32 %v1265_v50, %v399_v42 }
  0x9d   : >> { %v411_v53 = vshll.u32 %v1266_v52, %v399_v42  ;;  %v414_v55 = vshll.u32 %v1267_v54, %v399_v42  ;;  %vm417_vm1 = vcmp.lt.s32.totalorder %v398_v44, 1  ;;  %vm420_vm2 = vcmp.lt.s32.totalorder %v398_v44, 4 }
  0x9e   : >> { %v401_v56 = vshrl.u32 %v1263_v46, %v400_v45  ;;  %v403_v57 = vshrl.u32 %v1264_v48, %v400_v45  ;;  %v406_v58 = vshrl.u32 %v1265_v50, %v400_v45  ;;  %v409_v59 = vshrl.u32 %v1266_v52, %v400_v45 }
  0x9f   : >> { %v412_v60 = vshrl.u32 %v1267_v54, %v400_v45  ;;  %v415_v62 = vshrl.u32 %v1268_v61, %v400_v45  ;;  %vm418_vm3 = vcmp.lt.s32.totalorder %v398_v44, 2  ;;  %vm419_vm4 = vcmp.lt.s32.totalorder %v398_v44, 3 }
  0xa0   : >> { %v404_v5 = vor.u32 %v403_v57, %v402_v47  ;;  %v407_v6 = vor.u32 %v406_v58, %v405_v49  ;;  %v410_v7 = vor.u32 %v409_v59, %v408_v51  ;;  %v1472_v57 = vsub.s32 1, %v1444_v8 }
  0xa1   : >> { %v413_v9 = vor.u32 %v412_v60, %v411_v53  ;;  %v416_v10 = vor.u32 %v415_v62, %v414_v55  ;;  %v1468_v55 = vsub.s32 0, %v1444_v8  ;;  %v636_v61 = vsub.s32 5, %v1444_v8 }
  0xa2   : >> { %v421_v11 = vsel %vm417_vm1, %v401_v56, %v404_v5  ;;  %v422_v12 = vsel %vm420_vm2, %v410_v7, 2102212464  ;;  %v425_v13 = vsel %vm417_vm1, %v404_v5, %v407_v6  ;;  %v429_v14 = vsel %vm417_vm1, %v407_v6, %v410_v7  ;;  %v1129_v45 = vpop.eup %1128 }
  0xa3   : >> { %v423_v15 = vsel %vm419_vm4, %v407_v6, %v422_v12  ;;  %v426_v16 = vsel %vm420_vm2, %v413_v9, 920167782  ;;  %v430_v17 = vsel %vm420_vm2, %v416_v10, 1326507024  ;;  %v375_v50 = vmul.f32 0.6931472, %v1129_v45 }
  0xa4   : >> { %v427_v18 = vsel %vm419_vm4, %v410_v7, %v426_v16  ;;  %v431_v19 = vsel %vm419_vm4, %v413_v9, %v430_v17  ;;  %v424_v20 = vsel %vm418_vm3, %v421_v11, %v423_v15  ;;  %v611_v56 = vsub.s32 4, %v1444_v8 }
  0xa5   : >> { %v428_v22 = vsel %vm418_vm3, %v425_v13, %v427_v18  ;;  %v432_v23 = vsel %vm418_vm3, %v429_v14, %v431_v19  ;;  %v440_v28 = vmul.u32 %v433_v63, %v424_v20  ;;  %v1474_v58 = vmul.f32 -2.0, %v375_v50 }
  0xa6   : >> { %v1456_v24 = vmul.u32.u64.low %v433_v63, %v432_v23  ;;  %v1457_v25 = vmul.u32.u64.high %v433_v63, %v432_v23, %v1456_v24  ;;  %v1459_v26 = vmul.u32.u64.low %v433_v63, %v428_v22  ;;  %v1460_v27 = vmul.u32.u64.high %v433_v63, %v428_v22, %v1459_v26 }
  0xa7   : >> { %v1478_v5 = vsub.s32 2, %v1444_v8  ;;  %v663_v6 = vsub.s32 6, %v1444_v8  ;;  %v1482_v7 = vsub.s32 3, %v1444_v8  ;;  %v608_v9 = vrot.slane %v1255_v4, %v1468_v55 }
  0xa8   : >> { %vm442_vm5 = vc.u32 %v1457_v25, %v1459_v26  ;;  %v443_v30 = vadd.s32 1, %v1460_v27  ;;  %v441_v21 = vadd.s32 %v1459_v26, %v1457_v25  ;;  %v612_v10 = vrot.slane %v1255_v4, %v611_v56 }
  0xa9   : >> { %v690_v11 = vsub.s32 7, %v1444_v8  ;;  %v633_v12 = vrot.slane %v1255_v4, %v1472_v57  ;;  %1130 = vrsqrt.f32 %v1474_v58  ;;  %v637_v14 = vrot.slane %v1255_v4, %v636_v61 }
  0xaa   : >> { %v444_v31 = vsel %vm442_vm5, %v443_v30, %v1460_v27  ;;  %v660_v17 = vrot.slane %v1255_v4, %v1478_v5  ;;  %v664_v18 = vrot.slane %v1255_v4, %v663_v6  ;;  %v618_v22 = vrot.slane %v608_v9, %v1468_v55 }
  0xab   : >> { %v445_v32 = vadd.s32 %v444_v31, %v440_v28  ;;  %v622_v23 = vrot.slane %v612_v10, %v1468_v55  ;;  %v687_v24 = vrot.slane %v1255_v4, %v1482_v7  ;;  %v691_v37 = vrot.slane %v1255_v4, %v690_v11 }
  0xac   : >> { %v643_v27 = vrot.slane %v633_v12, %v1472_v57  ;;  %v647_v28 = vrot.slane %v637_v14, %v1472_v57  ;;  %v670_v30 = vrot.slane %v660_v17, %v1478_v5  ;;  %v674_v31 = vrot.slane %v664_v18, %v1478_v5 }
  0xad   : >> { %v446_v35 = vadd.s32 536870912, %v445_v32  ;;  %v697_v33 = vrot.slane %v687_v24, %v1482_v7  ;;  %vm379_vm9 = vcmp.eq.f32.partialorder %v1474_v58, inf  ;;  %vm381_vm10 = vcmp.eq.f32.partialorder %v1474_v58, 0.0 }
  0xae   : >> { %vm477_vm1 = vweird.f32 %v1450_v34 }
  0xaf   : >> { %v447_v36 = vshrl.u32 %v446_v35, 30  ;;  %v701_v35 = vrot.slane %v691_v37, %v1482_v7 }
  0xb1   : >> { %v448_v39 = vshll.u32 %v447_v36, 30  ;;  %v471_v62 = vsub.s32 4, %v447_v36 }
  0xb3   : >> { %v449_v40 = vsub.s32 %v445_v32, %v448_v39  ;;  %v472_v15 = vsel %vm387_vm7, %v471_v62, %v447_v36 }
  0xb4   : >> { %v474_v26 = vsel %vm386_vm8, 0, %v472_v15 }
  0xb5   : >> { %v451_v41 = vsub.s32 0, %v449_v40  ;;  %v582_v32 = vadd.s32 3, %v474_v26 }
  0xb7   : >> { %v1008_v42 = vmin.u32 %v451_v41, %v449_v40 }
  0xb9   : >> { %v453_v43 = vclz %v1008_v42 }
  0xbb   : >> { %v1009_v44 = vadd.s32 4294967294, %v453_v43  ;;  %v1131_v43 = vpop.eup %1130 }
  0xbd   : >> { %vm1010_vm6 = vcmp.lt.s32.totalorder %v1009_v44, 0 }
  0xbe   : >> { %v456_v46 = vsel %vm1010_vm6, 0, %v1009_v44 }
  0xbf   : >> { %v457_v47 = vsub.s32 32, %v456_v46  ;;  %v458_v48 = vshll.u32 %v449_v40, %v456_v46  ;;  %v461_v49 = vsub.s32 4294967266, %v456_v46 }
  0xc1   : >> { %v459_v51 = vshrl.u32 %v441_v21, %v457_v47  ;;  %v462_v52 = vadd.s32 127, %v461_v49  ;;  %v478_v47 = vand.u32 3, %v474_v26 }
  0xc3   : >> { %v460_v53 = vor.u32 %v459_v51, %v458_v48  ;;  %v463_v54 = vshll.u32 %v462_v52, 23  ;;  %v583_v48 = vand.u32 3, %v582_v32  ;;  %vm483_vm11 = vcmp.eq.s32.totalorder %v478_v47, 2 }
  0xc4   : >> { %vm480_vm13 = vcmp.eq.s32.totalorder %v478_v47, 0  ;;  %vm479_vm15 = vcmp.lt.s32.totalorder %v478_v47, 2 }
  0xc5   : >> { %v464_v59 = vor.u32 4788187, %v463_v54  ;;  %v467_v60 = vcvt.s32.f32 %v460_v53  ;;  %v378_v53 = vmul.f32 %v1131_v43, %v1474_v58  ;;  %vm588_vm12 = vcmp.eq.s32.totalorder %v583_v48, 2 }
  0xc6   : >> { %vm585_vm14 = vcmp.eq.s32.totalorder %v583_v48, 0  ;;  %vm584_vm0 = vcmp.lt.s32.totalorder %v583_v48, 2 }
  0xc7   : >> { %v465_v63 = vand.u32 2147483647, %v464_v59 }
  0xc9   : >> { %v468_v13 = vmul.f32 %v467_v60, %v465_v63  ;;  %v382_v60 = vand.u32 2147483648, %v1474_v58 }
  0xcb   : >> { %v469_v16 = vxor.u32 2147483648, %v468_v13 }
  0xcd   : >> { %v470_v25 = vsel %vm387_vm7, %v469_v16, %v468_v13  ;;  %v380_v13 = vsel %vm379_vm9, %v1474_v58, %v378_v53 }
  0xce   : >> { %v473_v29 = vsel %vm386_vm8, %v1450_v34, %v470_v25  ;;  %v383_v18 = vsel %vm381_vm10, %v382_v60, %v380_v13  ;;  %v728_v25 = vstv %s1525_s10 }
  0xcf   : >> { %1132 = vcosq.f32 %v473_v29 }
  0xd0   : >> { %1134 = vsinq.f32 %v473_v29 }
  0xd3   : >> { %v655_v19 = vpop.permute.xlu1 %654  ;;  %v602_v20 = vpop.permute.xlu0 %601 }
  0xd4   : >> { %v623_v38 = vmul.f32 %v618_v22, %v602_v20  ;;  %v624_v39 = vmul.f32 %v622_v23, %v602_v20  ;;  %v675_v44 = vmul.f32 %v670_v30, %v655_v19  ;;  %v676_v21 = vmul.f32 %v674_v31, %v655_v19 }
  0xd5   : >> { %v718_v30 = vstv %s598_s11 }
  0xd7   : >> { %v628_v36 = vpop.permute.xlu0 %627  ;;  %v682_v42 = vpop.permute.xlu1 %681 }
  0xd8   : >> { %v648_v40 = vmul.f32 %v643_v27, %v628_v36  ;;  %v649_v41 = vmul.f32 %v647_v28, %v628_v36  ;;  %v702_v49 = vmul.f32 %v697_v33, %v682_v42  ;;  %v703_v50 = vmul.f32 %v701_v35, %v682_v42 }
  0xd9   : >> { %v1133_v63 = vpop.eup %1132  ;;  %v726_v36 = vstv %s594_s13 }
  0xda   : >> { %v650_v45 = vadd.f32 %v648_v40, %v623_v38  ;;  %v651_v46 = vadd.f32 %v649_v41, %v624_v39  ;;  %v1135_v12 = vpop.eup %1134  ;;  %v484_v14 = vxor.u32 2147483648, %v1133_v63  ;;  %v1269_v41 = vmov (%p306_p10), 0  }
  0xdb   : >> { %v712_v62 = vpop.permute.xlu0 %711  ;;  %v481_v15 = vxor.u32 2147483648, %v1135_v12  ;;  %1141 = vset.pattern.permute.xlu1 (%p306_p10), %v1269_v41  ;;  %1140 = vset.pattern.permute.xlu0 (%p306_p10), %v1269_v41 }
  0xdc   : >> { %v677_v51 = vadd.f32 %v675_v44, %v650_v45  ;;  %v678_v52 = vadd.f32 %v676_v21, %v651_v46  ;;  %v485_v16 = vsel %vm483_vm11, %v484_v14, %v1135_v12  ;;  %v590_v17 = vsel %vm588_vm12, %v484_v14, %v1135_v12  ;;  %793 = vperm.xlu1 (%p306_p10), %1141, %v1399_v2  }
  0xdd   : >> { %v482_v19 = vsel %vm480_vm13, %v1133_v63, %v481_v15  ;;  %v587_v20 = vsel %vm585_vm14, %v1133_v63, %v481_v15  ;;  %740 = vperm.xlu0 (%p306_p10), %1140, %v1385_v0  }
  0xde   : >> { %v704_v54 = vadd.f32 %v702_v49, %v677_v51  ;;  %v705_v59 = vadd.f32 %v703_v50, %v678_v52  ;;  %v486_v22 = vsel %vm479_vm15, %v482_v19, %v485_v16  ;;  %v591_v23 = vsel %vm584_vm0, %v587_v20, %v590_v17 }
  0xdf   : >> { %v487_v24 = vsel %vm477_vm1, nan, %v486_v22  ;;  %v592_v37 = vsel %vm477_vm1, nan, %v591_v23  ;;  %v856_v16 = vstv (%p306_p10), %s1018_s9  ;;  %v864_v23 = vstv (%p306_p10), %s1017_s18 }
  0xe0   : >> { %v714_v9 = vadd.f32 %v712_v62, %v704_v54  ;;  %v715_v10 = vadd.f32 %v712_v62, %v705_v59  ;;  %v488_v26 = vmul.f32 %v487_v24, %v383_v18  ;;  %v593_v27 = vmul.f32 %v592_v37, %v383_v18  ;;  %820 = vperm.xlu1 (%p306_p10), %1141, %v1404_v3  }
  0xe1   : > { %766 = vperm.xlu0 (%p306_p10), %1140, %v1390_v1  }
  0xe2   : >> { %1136 = vtanh.f32 %v714_v9  ;;  %v729_v28 = vmul.f32 %v728_v25, %v488_v26  ;;  %v730_v29 = vmul.f32 %v728_v25, %v593_v27 }
  0xe3   : >> { %1138 = vtanh.f32 %v715_v10 }
  0xe4   : >> { %v733_v34 = vcombine.low %v729_v28, %v730_v29 }
  0xec   : >> { %v1137_v31 = vpop.eup %1136 }
  0xed   : >> { %v1139_v32 = vpop.eup %1138  ;;  %v719_v33 = vmul.f32 %v1137_v31, %v718_v30 }
  0xee   : >> { %v720_v35 = vmul.f32 %v1139_v32, %v718_v30 }
  0xf0   : >> { %v723_v58 = vcombine.low %v719_v33, %v720_v35 }
  0xf2   : >> { %v725_v38 = vsub.f32 %v1255_v4, %v723_v58  ;;  %308 = sbr.rel (!%p306_p10) target bundleno = 82 (0x52), region = 92 }
  0xf4   : >> { %v727_v39 = vmul.f32 %v726_v36, %v725_v38 }
  0xf6   : >> { %v735_v40 = vadd.f32 %v733_v34, %v727_v39  }
  0xf8   : >> { %v1649_v4 = vmov %v735_v40  ;;  %v747_v42 = vrot.slane (%p306_p10), %v735_v40, %v1468_v55  ;;  %v751_v43 = vrot.slane (%p306_p10), %v735_v40, %v611_v56  ;;  %v772_v44 = vrot.slane (%p306_p10), %v735_v40, %v1472_v57 }
  0xf9   : > { %v1019_v4 = vld [vmem:[%s1629_s2 + $0x1c] sm:$0xf]  ;;  %v776_v2 = vrot.slane %v735_v40, %v636_v61  ;;  %v799_v0 = vrot.slane %v735_v40, %v1478_v5  ;;  %v803_v1 = vrot.slane %v735_v40, %v663_v6  ;;  %v826_v45 = vrot.slane %v735_v40, %v1482_v7 }
  0xfa   : > { %849 = vperm.xlu0 %1140, %v1019_v4   ;;  %v830_v46 = vrot.slane %v735_v40, %v690_v11  ;;  %v757_v47 = vrot.slane %v747_v42, %v1468_v55  ;;  %v761_v56 = vrot.slane %v751_v43, %v1468_v55  ;;  %v782_v48 = vrot.slane %v772_v44, %v1472_v57 }
  0xfb   : > { %v786_v61 = vrot.slane %v776_v2, %v1472_v57  ;;  %v809_v49 = vrot.slane %v799_v0, %v1478_v5  ;;  %v813_v50 = vrot.slane %v803_v1, %v1478_v5  ;;  %v836_v6 = vrot.slane %v826_v45, %v1482_v7 }
  0xfc   : > { %v840_v51 = vrot.slane %v830_v46, %v1482_v7 }
 0x15b   : > { %v794_v3 = vpop.permute.xlu1 %793 }
 0x15c   : > { %v741_v21 = vpop.permute.xlu0 %740  ;;  %v814_v60 = vmul.f32 %v809_v49, %v794_v3  ;;  %v815_v55 = vmul.f32 %v813_v50, %v794_v3 }
 0x15d   : > { %v762_v53 = vmul.f32 %v757_v47, %v741_v21  ;;  %v763_v8 = vmul.f32 %v761_v56, %v741_v21 }
 0x15f   : > { %v821_v59 = vpop.permute.xlu1 %820 }
 0x160   : > { %v767_v52 = vpop.permute.xlu0 %766  ;;  %v841_v9 = vmul.f32 %v836_v6, %v821_v59  ;;  %v842_v57 = vmul.f32 %v840_v51, %v821_v59 }
 0x161   : > { %v787_v11 = vmul.f32 %v782_v48, %v767_v52  ;;  %v788_v54 = vmul.f32 %v786_v61, %v767_v52 }
 0x163   : > { %v789_v62 = vadd.f32 %v787_v11, %v762_v53  ;;  %v790_v63 = vadd.f32 %v788_v54, %v763_v8 }
 0x165   : > { %v816_v10 = vadd.f32 %v814_v60, %v789_v62  ;;  %v817_v12 = vadd.f32 %v815_v55, %v790_v63 }
 0x167   : > { %v843_v13 = vadd.f32 %v841_v9, %v816_v10  ;;  %v844_v5 = vadd.f32 %v842_v57, %v817_v12 }
 0x179   : > { %v850_v14 = vpop.permute.xlu0 %849 }
 0x17a   : > { %v852_v7 = vadd.f32 %v850_v14, %v843_v13  ;;  %v853_v15 = vadd.f32 %v850_v14, %v844_v5 }
 0x17c   : > { %1142 = vtanh.f32 %v852_v7 }
 0x17d   : > { %1144 = vtanh.f32 %v853_v15 }
 0x186   : > { %v1143_v17 = vpop.eup %1142 }
 0x187   : > { %v1145_v18 = vpop.eup %1144  ;;  %v857_v19 = vmul.f32 %v1143_v17, %v856_v16 }
 0x188   : > { %v858_v20 = vmul.f32 %v1145_v18, %v856_v16 }
 0x18a   : > { %v861_v22 = vcombine.low %v857_v19, %v858_v20 }
 0x18c   : > { %v863_v24 = vsub.f32 %v735_v40, %v861_v22 }
 0x18e   : > { %v865_v37 = vmul.f32 %v864_v23, %v863_v24 }
 0x190   : > { %v1020_v25 = vclamps-f32 %v865_v37, 1.0 }
 0x192   : > { %868 = vst [vmem:[%s257_s15] sm:$0xff] %v1020_v25 }
 0x193   : > { %1174 = shalt.err (!%p1171_p5)
}
 0x194   : > { %s1175_s1 = scalar_lea.hbm %s1576_s22, 128  ;;  %s1179_s8 = scalar_lea.hbm %s1632_s5, 256 }
 0x195   : > { %p1176_p6 = scmp.ne.s32.totalorder %s1576_s22, %s1175_s1  ;;  %p1180_p12 = scmp.lt.u32.totalorder %s1576_s22, %s1632_s5 }
 0x196   : > { %p1181_p10 = scmp.lt.u32.totalorder %s1179_s8, %s1175_s1  ;;  %p1183_p13 = scmp.lt.u32.totalorder %s1175_s1, %s1576_s22 }
 0x197   : > { %p1177_p7 = pnand %p1176_p6, %p1344_p4 }
 0x198   : > { %p1182_p11 = por %p1181_p10, %p1180_p12 }
 0x199   : > { %p1178_p9 = pneg %p1177_p7 }
 0x19a   : > { %p1184_p0 = por %p1183_p13, %p1182_p11 }
 0x19c   : > { %p1185_p1 = pnand %p1184_p0, %p1178_p9 }
 0x19e   : > { %1188 = shalt.err (!%p1185_p1)
}
 0x19f   : > { %1040 = dma.vmem_to_hbm [thread:$0]  (%p1344_p4), %s1578_s19, 128, %s1576_s22, %s870_s27  }
 0x1a0 PF: > { %p1052_p2 = scmp.ge.s32.totalorder %s1251_s25, 2  ;;  %s898_s11 = sand.u32 1, %s1231_s20  }
 0x1a1   : > { %s899_s13 = scalar_lea.sflag [#allocation4], %s898_s11 }
 0x1a2   : > { %p1047_p3 = pnand %p1052_p2, %p1351_p8 }
 0x1a4   : > { %1226 = dma.done.wait (!%p1047_p3), %s899_s13, 128  }
 0x1a5   : > { %1228 = vsyncadd (!%p1047_p3), %s899_s13, 4294967168  ;;  %s20_s25 = sadd.s32 1, %s1251_s25   ;;  %s1652_s3 = sld [smem:[#allocation9_spill]] }
 0x1a6   : > { %p17_p5 = scmp.ge.s32.totalorder %s20_s25, 4   ;;  %s1653_s22 = sld [smem:[#allocation12_spill]] }
 0x1a7   : > { %s1654_s23 = sld [smem:[#allocation10_spill]]  ;;  %s1655_s24 = sld [smem:[#allocation11_spill]] }
 0x1a8   : > { %s1656_s20 = smov %s1235_s21  ;;  %19 = sbr.rel (!%p17_p5) target bundleno = 9 (0x9), region = 103 }
 0x1ab   : > { %s1657_s21 = smov %s1652_s3 }
 0x1af   :  { %904 = vsyncpa [#allocation4], 1 }
 0x1b0   :  { %906 = vsyncpa [#allocation4 + $0x1], 1 }
 0x1b1   :  { %907 = vsyncpa [#allocation5], 1 }
 0x1b2   :  { %909 = vsyncpa [#allocation5 + $0x1], 1 }

</bundles_post_ra>
